<compile_context>
chip_gen: v5e
topology: v5e:2x2
jax: 0.10.0
libtpu: 0.0.40
codegen_flags: <defaults>
</compile_context>

<pallas_src>
import jax
import jax.numpy as jnp
from jax.experimental import pallas as pl
from jax.experimental.pallas import tpu as pltpu

IN_FEATURES = 2 * 56     # 112
HIDDEN = 1024
OUT_FEATURES = 2
K_PAD = 128              # padded contraction dim for matmul1
N_PAD = 128              # padded (lane-dense) output width


def _round_up(n, m):
    return ((n + m - 1) // m) * m


def vtcnn_kernel(x_ref, w1_ref, b1_ref, w2_ref, b2_ref, o_ref):
    # Linear 1 on the MXU: (TB,128)bf16 @ (128,1024)bf16 -> f32 accumulate.
    h = jnp.dot(x_ref[...], w1_ref[...], preferred_element_type=jnp.float32)
    # Fused bias + tanh, down-cast to bf16: bf16 EUP tanh on v6e/v7x, single bf16
    # materialization of the (TB,1024) hidden tensor (no separate f32 pass).
    h = jnp.tanh((h + b1_ref[...]).astype(jnp.bfloat16))
    # Dropout(0.5): identity in eval/inference mode.
    # TODO(synk): training-mode dropout (pltpu.prng_seed + pltpu.prng_random_bits mask) not emitted.
    # Linear 2 on the MXU: (TB,1024)bf16 @ (1024,128)bf16 -> f32 (cols 2..127 are zero pad).
    y = jnp.dot(h, w2_ref[...], preferred_element_type=jnp.float32)
    # Sigmoid + lane-dense (TB,128) f32 store (unmasked vst).
    o_ref[...] = jax.nn.sigmoid(y + b2_ref[...]).astype(o_ref.dtype)


def _choose_tb(B, tb_max):
    # Multiple of 16 (bf16 sublane packing), capped at tb_max, and split so the
    # grid has >= 2 steps when the batch allows it (v7x megacore sharding).
    tb = _round_up(B, 16)
    if tb > 16:
        tb = min(tb, _round_up(pl.cdiv(B, 2), 16))
    return min(tb, tb_max)


def vtcnn_forward(x, w1, b1, w2, b2, *, tb=2048):
    """x: (B, 2, 56) float32 -> (B, 2) float32 (eval-mode forward)."""
    B = x.shape[0]
    TB = _choose_tb(B, tb)
    B_pad = _round_up(B, TB)
    grid = (B_pad // TB,)

    # Single fused wrapper pass over x: flatten (row-major), cast to bf16, pad
    # batch -> B_pad and contraction 112 -> 128 with zeros.
    x_p = jnp.pad(
        x.reshape(B, -1).astype(jnp.bfloat16),
        ((0, B_pad - B), (0, K_PAD - IN_FEATURES)),
    )

    # Weight/bias prep (tiny; constant-folded/cached under jit).
    w1_p = jnp.pad(w1.astype(jnp.bfloat16), ((0, K_PAD - IN_FEATURES), (0, 0)))
    w2_p = jnp.pad(w2.astype(jnp.bfloat16), ((0, 0), (0, N_PAD - OUT_FEATURES)))
    b1_2d = b1.reshape(1, HIDDEN).astype(jnp.float32)
    b2_p = jnp.pad(b2.reshape(1, OUT_FEATURES).astype(jnp.float32),
                   ((0, 0), (0, N_PAD - OUT_FEATURES)))

    out = pl.pallas_call(
        vtcnn_kernel,
        out_shape=jax.ShapeDtypeStruct((B_pad, N_PAD), jnp.float32),
        grid=grid,
        in_specs=[
            pl.BlockSpec((TB, K_PAD), lambda i: (i, 0)),        # x tile, pipelined (bf16)
            pl.BlockSpec((K_PAD, HIDDEN), lambda i: (0, 0)),    # w1 resident (bf16)
            pl.BlockSpec((1, HIDDEN), lambda i: (0, 0)),        # b1 resident (f32)
            pl.BlockSpec((HIDDEN, N_PAD), lambda i: (0, 0)),    # w2 resident (bf16)
            pl.BlockSpec((1, N_PAD), lambda i: (0, 0)),         # b2 resident (f32)
        ],
        out_specs=pl.BlockSpec((TB, N_PAD), lambda i: (i, 0)),
        compiler_params=pltpu.CompilerParams(
            dimension_semantics=("parallel",),                  # megacore sharding
            vmem_limit_bytes=48 * 1024 * 1024,                  # ~17-20 MiB used at TB=2048
        ),
    )(x_p, w1_p, b1_2d, w2_p, b2_p)

    return out[:B, :OUT_FEATURES]


def init_params(key):
    """Deterministic init mimicking nn.Linear default (U(-1/sqrt(fan_in), 1/sqrt(fan_in)))."""
    k1, k2, k3, k4 = jax.random.split(key, 4)
    bound1 = 1.0 / jnp.sqrt(IN_FEATURES)
    bound2 = 1.0 / jnp.sqrt(HIDDEN)
    w1 = jax.random.uniform(k1, (IN_FEATURES, HIDDEN), jnp.float32, -bound1, bound1)
    b1 = jax.random.uniform(k2, (HIDDEN,), jnp.float32, -bound1, bound1)
    w2 = jax.random.uniform(k3, (HIDDEN, OUT_FEATURES), jnp.float32, -bound2, bound2)
    b2 = jax.random.uniform(k4, (OUT_FEATURES,), jnp.float32, -bound2, bound2)
    return w1, b1, w2, b2


def _reference(x, w1, b1, w2, b2):
    # Pure-JAX f32 reference (eval-mode dropout = identity).
    B = x.shape[0]
    return jax.nn.sigmoid(jnp.tanh(x.reshape(B, -1) @ w1 + b1) @ w2 + b2)


if __name__ == "__main__":
    key = jax.random.PRNGKey(0)
    kx, kx2, kx3, kp = jax.random.split(key, 4)
    w1, b1, w2, b2 = init_params(kp)

    # bf16 MXU inputs / bf16 tanh with f32 accumulation -> loosened tolerance.
    ATOL = 2e-2

    # Case 1: tiny batch (single grid step, TB=16).
    B = 2
    x = jax.random.normal(kx, (B, 2, 56), dtype=jnp.float32)
    out = jax.block_until_ready(vtcnn_forward(x, w1, b1, w2, b2))
    ref = _reference(x, w1, b1, w2, b2)
    assert out.shape == (B, OUT_FEATURES)
    assert jnp.allclose(out, ref, atol=ATOL, rtol=0), float(jnp.max(jnp.abs(out - ref)))

    # Case 2: ragged batch, small tile -> multi-step grid with resident weights.
    B2 = 37
    x2 = jax.random.normal(kx2, (B2, 2, 56), dtype=jnp.float32)
    out2 = jax.block_until_ready(vtcnn_forward(x2, w1, b1, w2, b2, tb=16))
    ref2 = _reference(x2, w1, b1, w2, b2)
    assert out2.shape == (B2, OUT_FEATURES)
    assert jnp.allclose(out2, ref2, atol=ATOL, rtol=0), float(jnp.max(jnp.abs(out2 - ref2)))

    # Case 3: medium batch, default tb -> auto-split into >= 2 grid steps.
    B3 = 300
    x3 = jax.random.normal(kx3, (B3, 2, 56), dtype=jnp.float32)
    out3 = jax.block_until_ready(vtcnn_forward(x3, w1, b1, w2, b2))
    ref3 = _reference(x3, w1, b1, w2, b2)
    assert out3.shape == (B3, OUT_FEATURES)
    assert jnp.allclose(out3, ref3, atol=ATOL, rtol=0), float(jnp.max(jnp.abs(out3 - ref3)))

    print("KERNEL_OK")
</pallas_src>

<mosaic_0001>
module attributes {stable_mosaic.version = 11 : i64} {
  func.func @vtcnn_kernel(%arg0: i32, %arg1: memref<16x128xbf16, #tpu.memory_space<vmem>>, %arg2: memref<128x1024xbf16, #tpu.memory_space<vmem>>, %arg3: memref<1x1024xf32, #tpu.memory_space<vmem>>, %arg4: memref<1024x128xbf16, #tpu.memory_space<vmem>>, %arg5: memref<1x128xf32, #tpu.memory_space<vmem>>, %arg6: memref<16x128xf32, #tpu.memory_space<vmem>>) attributes {dimension_semantics = [#tpu.dimension_semantics<parallel>], iteration_bounds = array<i64: 1>, scalar_prefetch = 0 : i64, scratch_operands = 0 : i64, tpu.core_type = #tpu.core_type<tc>, window_params = [{transform_indices = @transform_0, window_bounds = array<i64: 16, 128>}, {pipeline_mode = #tpu.pipeline_mode<synchronous>, transform_indices = @transform_1, window_bounds = array<i64: 128, 1024>}, {pipeline_mode = #tpu.pipeline_mode<synchronous>, transform_indices = @transform_2, window_bounds = array<i64: 1, 1024>}, {pipeline_mode = #tpu.pipeline_mode<synchronous>, transform_indices = @transform_3, window_bounds = array<i64: 1024, 128>}, {pipeline_mode = #tpu.pipeline_mode<synchronous>, transform_indices = @transform_4, window_bounds = array<i64: 1, 128>}, {transform_indices = @transform_5, window_bounds = array<i64: 16, 128>}]} {
    %c0 = arith.constant 0 : index
    %c0_0 = arith.constant 0 : index
    %0 = vector.load %arg1[%c0, %c0_0] : memref<16x128xbf16, #tpu.memory_space<vmem>>, vector<16x128xbf16>
    %c0_1 = arith.constant 0 : index
    %c0_2 = arith.constant 0 : index
    %1 = vector.load %arg2[%c0_1, %c0_2] : memref<128x1024xbf16, #tpu.memory_space<vmem>>, vector<128x1024xbf16>
    %cst = arith.constant dense<0.000000e+00> : vector<16x1024xf32>
    %2 = tpu.matmul %0, %1, %cst {dimension_numbers = #tpu.dot_dimension_numbers<[1], [0], [0], [1], [0, 0, 1, 1], [], []>} : vector<16x128xbf16>, vector<128x1024xbf16>, vector<16x1024xf32> -> vector<16x1024xf32>
    %c0_3 = arith.constant 0 : index
    %c0_4 = arith.constant 0 : index
    %3 = vector.load %arg3[%c0_3, %c0_4] : memref<1x1024xf32, #tpu.memory_space<vmem>>, vector<1x1024xf32>
    %4 = vector.broadcast %3 : vector<1x1024xf32> to vector<16x1024xf32>
    %5 = arith.addf %2, %4 : vector<16x1024xf32>
    %6 = arith.truncf %5 : vector<16x1024xf32> to vector<16x1024xbf16>
    %7 = math.tanh %6 : vector<16x1024xbf16>
    %c0_5 = arith.constant 0 : index
    %c0_6 = arith.constant 0 : index
    %8 = vector.load %arg4[%c0_5, %c0_6] : memref<1024x128xbf16, #tpu.memory_space<vmem>>, vector<1024x128xbf16>
    %cst_7 = arith.constant dense<0.000000e+00> : vector<16x128xf32>
    %9 = tpu.matmul %7, %8, %cst_7 {dimension_numbers = #tpu.dot_dimension_numbers<[1], [0], [0], [1], [0, 0, 1, 1], [], []>} : vector<16x1024xbf16>, vector<1024x128xbf16>, vector<16x128xf32> -> vector<16x128xf32>
    %c0_8 = arith.constant 0 : index
    %c0_9 = arith.constant 0 : index
    %10 = vector.load %arg5[%c0_8, %c0_9] : memref<1x128xf32, #tpu.memory_space<vmem>>, vector<1x128xf32>
    %11 = vector.broadcast %10 : vector<1x128xf32> to vector<16x128xf32>
    %12 = arith.addf %9, %11 : vector<16x128xf32>
    %13 = arith.negf %12 : vector<16x128xf32>
    %14 = math.exp %13 : vector<16x128xf32>
    %cst_10 = arith.constant 1.000000e+00 : f32
    %15 = vector.broadcast %cst_10 : f32 to vector<16x128xf32>
    %16 = arith.addf %15, %14 : vector<16x128xf32>
    %17 = arith.divf %15, %16 : vector<16x128xf32>
    %c0_11 = arith.constant 0 : index
    %c0_12 = arith.constant 0 : index
    %18 = vector.load %arg6[%c0_11, %c0_12] : memref<16x128xf32, #tpu.memory_space<vmem>>, vector<16x128xf32>
    tpu.vector_store %arg6[%c0_11, %c0_12], %17 {strides = array<i32>} : memref<16x128xf32, #tpu.memory_space<vmem>>, vector<16x128xf32>,
    return
  }
  func.func @transform_0(%arg0: i32) -> (i32, i32) {
    %c0_i32 = arith.constant 0 : i32
    %c0_i32_0 = arith.constant 0 : i32
    return %arg0, %c0_i32 : i32, i32
  }
  func.func @transform_1(%arg0: i32) -> (i32, i32) {
    %c0_i32 = arith.constant 0 : i32
    %c0_i32_0 = arith.constant 0 : i32
    %c0_i32_1 = arith.constant 0 : i32
    return %c0_i32, %c0_i32_0 : i32, i32
  }
  func.func @transform_2(%arg0: i32) -> (i32, i32) {
    %c0_i32 = arith.constant 0 : i32
    %c0_i32_0 = arith.constant 0 : i32
    %c0_i32_1 = arith.constant 0 : i32
    return %c0_i32, %c0_i32_0 : i32, i32
  }
  func.func @transform_3(%arg0: i32) -> (i32, i32) {
    %c0_i32 = arith.constant 0 : i32
    %c0_i32_0 = arith.constant 0 : i32
    %c0_i32_1 = arith.constant 0 : i32
    return %c0_i32, %c0_i32_0 : i32, i32
  }
  func.func @transform_4(%arg0: i32) -> (i32, i32) {
    %c0_i32 = arith.constant 0 : i32
    %c0_i32_0 = arith.constant 0 : i32
    %c0_i32_1 = arith.constant 0 : i32
    return %c0_i32, %c0_i32_0 : i32, i32
  }
  func.func @transform_5(%arg0: i32) -> (i32, i32) {
    %c0_i32 = arith.constant 0 : i32
    %c0_i32_0 = arith.constant 0 : i32
    return %arg0, %c0_i32 : i32, i32
  }
}

</mosaic_0001>

<bundles_post_ra>
// kernel: tpu_custom_call.1
= control target key start
LH: loop header
LB: loop body
LE: loop exit
PB: predicated region body
PF: predicated region fallthrough
CT: control target
= control target key end

     0   :  { %10 = vsyncpa [#allocation3], 0  ;;  %s2247_s0 = inlined_call_operand.hbm [shape: bf16[16,128], index: 0, kind: input, shape index: {}]   ;;  %s2248_s1 = inlined_call_operand.hbm [shape: bf16[128,1024], index: 1, kind: input, shape index: {}]   ;;  %s2249_s2 = inlined_call_operand.hbm [shape: f32[1,1024], index: 2, kind: input, shape index: {}]   ;;  %s2250_s3 = inlined_call_operand.hbm [shape: bf16[1024,128], index: 3, kind: input, shape index: {}]   ;;  %s2251_s4 = inlined_call_operand.vmem [shape: f32[1,128], index: 4, kind: input, shape index: {}]   ;;  %s2252_s5 = inlined_call_operand.hbm [shape: f32[16,128], index: 5, kind: output, shape index: {}]  }
   0x1   :  { %11 = vsyncpa [#allocation6], 0 }
   0x2   :  { %12 = vsyncpa [#allocation9], 0  ;;  %s31_s20 = sshll.u32 %s2248_s1, 4  ;;  %s32_s20 = int_to_ptr.hbm [resolvable:$true] %s31_s20 }
   0x3   :  { %13 = vsyncpa [#allocation4], 0  ;;  %s2168_s21 = smov [#allocation5]   ;;  %s18_s25 = sshll.u32 %s2247_s0, 4  ;;  %s19_s25 = int_to_ptr.hbm [resolvable:$true] %s18_s25 }
   0x4   :  { %s33_s22 = sshll.u32 %s2168_s21, 4  ;;  %s2169_s26 = smov 512   ;;  %s34_s22 = int_to_ptr.vmem [resolvable:$true] %s33_s22 }
   0x5   :  { %s2170_s27 = smov 32   ;;  %s2171_s28 = smov [#allocation2]  }
   0x6   :  { %39 = dma.hbm_to_vmem [thread:$0]  %s32_s20, 8192, %s34_s22, [#allocation6], %s2169_s26, %s2169_s26, %s2170_s27  }
   0x7   :  { %s20_s29 = sshll.u32 %s2171_s28, 4  ;;  %s2172_s30 = smov 64   ;;  %s21_s29 = int_to_ptr.vmem [resolvable:$true] %s20_s29 }
   0x8   :  { %s2173_s6 = smov 4   ;;  %s45_s8 = sshll.u32 %s2249_s2, 4  ;;  %s46_s8 = int_to_ptr.hbm [resolvable:$true] %s45_s8 }
   0x9   :  { %26 = dma.hbm_to_vmem [thread:$0]  %s19_s25, 128, %s21_s29, [#allocation3], %s2172_s30, %s2172_s30, %s2173_s6  }
   0xa   :  { %s2174_s9 = smov [#allocation7]   ;;  %s55_s12 = sshll.u32 %s2250_s3, 4  ;;  %s56_s12 = int_to_ptr.hbm [resolvable:$true] %s55_s12 }
   0xb   :  { %s47_s10 = sshll.u32 %s2174_s9, 4  ;;  %s2175_s13 = smov [#allocation8]   ;;  %s48_s10 = int_to_ptr.vmem [resolvable:$true] %s47_s10 }
   0xc   :  { %50 = dma.hbm_to_vmem [thread:$0]  %s46_s8, 128, %s48_s10, [#allocation6]  }
   0xd   :  { %s57_s14 = sshll.u32 %s2175_s13, 4  ;;  %s58_s14 = int_to_ptr.vmem [resolvable:$true] %s57_s14 }
   0xe   :  { %63 = dma.hbm_to_vmem [thread:$0]  %s56_s12, 8192, %s58_s14, [#allocation9], %s2172_s30, %s2172_s30, %s2173_s6  }
   0xf   :  { %2160 = dma.done.wait [#allocation3], 128  }
  0x10   :  { %2161 = vsyncadd [#allocation3], 4294967168 }
  0x11   :  { %2162 = dma.done.wait [#allocation6], 8320  }
  0x12   :  { %2163 = vsyncadd [#allocation6], 4294958976 }
  0x13   :  { %2164 = dma.done.wait [#allocation9], 8192  }
  0x14   :  { %2165 = vsyncadd [#allocation9], 4294959104  ;;  %v1571_v0 = vld [vmem:[#allocation5 + $0x1c0] sm:$0xf]  ;;  %v1916_v2 = vld [vmem:[#allocation5 + $0x1c4] sm:$0xf] }
  0x15   :  { %v1920_v1 = vld [vmem:[#allocation5 + $0x1dc] sm:$0xf0]  ;;  %v1573_v4 = vld [vmem:[#allocation5 + $0x1e0] sm:$0xf0]  ;;  %v1579_v5 = vld [vmem:[#allocation5 + $0x1c8] sm:$0xf] }
  0x16   :  { %v1572_v3 = vor.u32 %v1920_v1, %v1571_v0  ;;  %v1921_v6 = vld [vmem:[#allocation5 + $0x1e4] sm:$0xf0]  ;;  %v1576_v7 = vor.u32 %v1916_v2, %v1573_v4  ;;  %v1917_v9 = vld [vmem:[#allocation5 + $0x1cc] sm:$0xf]  ;;  %v1539_v11 = vld [vmem:[#allocation5 + $0x180] sm:$0xf] }
  0x17   :  { %v1580_v8 = vor.u32 %v1921_v6, %v1579_v5  ;;  %v1581_v10 = vld [vmem:[#allocation5 + $0x1e8] sm:$0xf0]  ;;  %v1912_v13 = vld [vmem:[#allocation5 + $0x19c] sm:$0xf0]  ;;  %v1908_v14 = vld [vmem:[#allocation5 + $0x184] sm:$0xf] }
  0x18   :  { %492 = vmatpush.bf16.msra.mxu0 %v1572_v3  ;;  %v1584_v12 = vor.u32 %v1917_v9, %v1581_v10  ;;  %v1541_v15 = vld [vmem:[#allocation5 + $0x1a0] sm:$0xf0]  ;;  %506 = vmatpush.bf16.msra.mxu1 %v1576_v7  ;;  %v1540_v16 = vor.u32 %v1912_v13, %v1539_v11  ;;  %v1547_v18 = vld [vmem:[#allocation5 + $0x188] sm:$0xf]  ;;  %v1909_v20 = vld [vmem:[#allocation5 + $0x18c] sm:$0xf] }
  0x19   :  { %520 = vmatpush.bf16.msra.mxu2 %v1580_v8  ;;  %v1544_v17 = vor.u32 %v1908_v14, %v1541_v15  ;;  %v1913_v19 = vld [vmem:[#allocation5 + $0x1a4] sm:$0xf0]  ;;  %v1549_v22 = vld [vmem:[#allocation5 + $0x1a8] sm:$0xf0]  ;;  %v1507_v23 = vld [vmem:[#allocation5 + $0x140] sm:$0xf] }
  0x1a   :  { %534 = vmatpush.bf16.msra.mxu3 %v1584_v12  ;;  %v1548_v21 = vor.u32 %v1913_v19, %v1547_v18  ;;  %v1904_v24 = vld [vmem:[#allocation5 + $0x15c] sm:$0xf0]  ;;  %v1552_v25 = vor.u32 %v1909_v20, %v1549_v22  ;;  %v1900_v26 = vld [vmem:[#allocation5 + $0x144] sm:$0xf]  ;;  %v1515_v28 = vld [vmem:[#allocation5 + $0x148] sm:$0xf] }
  0x1b   :  { %v1509_v27 = vld [vmem:[#allocation5 + $0x160] sm:$0xf0]  ;;  %v1508_v29 = vor.u32 %v1904_v24, %v1507_v23  ;;  %v1905_v30 = vld [vmem:[#allocation5 + $0x164] sm:$0xf0]  ;;  %v1901_v31 = vld [vmem:[#allocation5 + $0x14c] sm:$0xf] }
  0x1c   :  { %493 = vmatpush.bf16.msra.mxu0 %v1540_v16  ;;  %v1517_v32 = vld [vmem:[#allocation5 + $0x168] sm:$0xf0]  ;;  %507 = vmatpush.bf16.msra.mxu1 %v1544_v17  ;;  %v1512_v33 = vor.u32 %v1900_v26, %v1509_v27  ;;  %v1516_v34 = vor.u32 %v1905_v30, %v1515_v28  ;;  %v1475_v35 = vld [vmem:[#allocation5 + $0x100] sm:$0xf]  ;;  %v1892_v37 = vld [vmem:[#allocation5 + $0x104] sm:$0xf] }
  0x1d   :  { %521 = vmatpush.bf16.msra.mxu2 %v1548_v21  ;;  %v1896_v36 = vld [vmem:[#allocation5 + $0x11c] sm:$0xf0]  ;;  %v1520_v38 = vor.u32 %v1901_v31, %v1517_v32  ;;  %v1477_v39 = vld [vmem:[#allocation5 + $0x120] sm:$0xf0]  ;;  %v1483_v40 = vld [vmem:[#allocation5 + $0x108] sm:$0xf] }
  0x1e   :  { %535 = vmatpush.bf16.msra.mxu3 %v1552_v25  ;;  %v1897_v41 = vld [vmem:[#allocation5 + $0x124] sm:$0xf0]  ;;  %v1893_v42 = vld [vmem:[#allocation5 + $0x10c] sm:$0xf]  ;;  %v1476_v44 = vor.u32 %v1896_v36, %v1475_v35  ;;  %v1480_v45 = vor.u32 %v1892_v37, %v1477_v39  ;;  %v1443_v47 = vld [vmem:[#allocation5 + $0xc0] sm:$0xf] }
  0x1f   :  { %v1485_v43 = vld [vmem:[#allocation5 + $0x128] sm:$0xf0]  ;;  %v1484_v46 = vor.u32 %v1897_v41, %v1483_v40  ;;  %v1888_v48 = vld [vmem:[#allocation5 + $0xdc] sm:$0xf0]  ;;  %v1884_v49 = vld [vmem:[#allocation5 + $0xc4] sm:$0xf] }
  0x20   :  { %494 = vmatpush.bf16.msra.mxu0 %v1508_v29  ;;  %508 = vmatpush.bf16.msra.mxu1 %v1512_v33  ;;  %v1488_v50 = vor.u32 %v1893_v42, %v1485_v43  ;;  %v1445_v51 = vld [vmem:[#allocation5 + $0xe0] sm:$0xf0]  ;;  %v1451_v52 = vld [vmem:[#allocation5 + $0xc8] sm:$0xf]  ;;  %v1885_v54 = vld [vmem:[#allocation5 + $0xcc] sm:$0xf]  ;;  %v1444_v56 = vor.u32 %v1888_v48, %v1443_v47 }
  0x21   :  { %522 = vmatpush.bf16.msra.mxu2 %v1516_v34  ;;  %v1889_v53 = vld [vmem:[#allocation5 + $0xe4] sm:$0xf0]  ;;  %v1453_v55 = vld [vmem:[#allocation5 + $0xe8] sm:$0xf0]  ;;  %v1448_v57 = vor.u32 %v1884_v49, %v1445_v51  ;;  %v1411_v59 = vld [vmem:[#allocation5 + $0x80] sm:$0xf] }
  0x22   :  { %536 = vmatpush.bf16.msra.mxu3 %v1520_v38  ;;  %v1452_v58 = vor.u32 %v1889_v53, %v1451_v52  ;;  %v1880_v60 = vld [vmem:[#allocation5 + $0x9c] sm:$0xf0]  ;;  %v1876_v61 = vld [vmem:[#allocation5 + $0x84] sm:$0xf]  ;;  %v1456_v62 = vor.u32 %v1885_v54, %v1453_v55  ;;  %v1419_v0 = vld [vmem:[#allocation5 + $0x88] sm:$0xf] }
  0x23   :  { %v1413_v63 = vld [vmem:[#allocation5 + $0xa0] sm:$0xf0]  ;;  %v1881_v1 = vld [vmem:[#allocation5 + $0xa4] sm:$0xf0]  ;;  %v1877_v2 = vld [vmem:[#allocation5 + $0x8c] sm:$0xf]  ;;  %v1412_v4 = vor.u32 %v1880_v60, %v1411_v59 }
  0x24   :  { %495 = vmatpush.bf16.msra.mxu0 %v1476_v44  ;;  %509 = vmatpush.bf16.msra.mxu1 %v1480_v45  ;;  %v1421_v3 = vld [vmem:[#allocation5 + $0xa8] sm:$0xf0]  ;;  %v1416_v5 = vor.u32 %v1876_v61, %v1413_v63  ;;  %v1420_v6 = vor.u32 %v1881_v1, %v1419_v0  ;;  %v1379_v7 = vld [vmem:[#allocation5 + $0x40] sm:$0xf]  ;;  %v1868_v9 = vld [vmem:[#allocation5 + $0x44] sm:$0xf] }
  0x25   :  { %523 = vmatpush.bf16.msra.mxu2 %v1484_v46  ;;  %v1872_v8 = vld [vmem:[#allocation5 + $0x5c] sm:$0xf0]  ;;  %v1424_v10 = vor.u32 %v1877_v2, %v1421_v3  ;;  %v1381_v11 = vld [vmem:[#allocation5 + $0x60] sm:$0xf0]  ;;  %v1387_v12 = vld [vmem:[#allocation5 + $0x48] sm:$0xf] }
  0x26   :  { %537 = vmatpush.bf16.msra.mxu3 %v1488_v50  ;;  %v1873_v13 = vld [vmem:[#allocation5 + $0x64] sm:$0xf0]  ;;  %v1869_v14 = vld [vmem:[#allocation5 + $0x4c] sm:$0xf]  ;;  %v1380_v16 = vor.u32 %v1872_v8, %v1379_v7  ;;  %v1347_v17 = vld [vmem:[#allocation5] sm:$0xf]  ;;  %v1384_v19 = vor.u32 %v1868_v9, %v1381_v11 }
  0x27   :  { %v1389_v15 = vld [vmem:[#allocation5 + $0x68] sm:$0xf0]  ;;  %v1864_v18 = vld [vmem:[#allocation5 + $0x1c] sm:$0xf0]  ;;  %v1388_v20 = vor.u32 %v1873_v13, %v1387_v12  ;;  %v1860_v21 = vld [vmem:[#allocation5 + $0x4] sm:$0xf] }
  0x28   :  { %496 = vmatpush.bf16.msra.mxu0 %v1444_v56  ;;  %510 = vmatpush.bf16.msra.mxu1 %v1448_v57  ;;  %v1349_v22 = vld [vmem:[#allocation5 + $0x20] sm:$0xf0]  ;;  %v1355_v23 = vld [vmem:[#allocation5 + $0x8] sm:$0xf]  ;;  %v1392_v24 = vor.u32 %v1869_v14, %v1389_v15  ;;  %v1861_v26 = vld [vmem:[#allocation5 + $0xc] sm:$0xf]  ;;  %v1348_v31 = vor.u32 %v1864_v18, %v1347_v17 }
  0x29   :  { %524 = vmatpush.bf16.msra.mxu2 %v1452_v58  ;;  %v1865_v25 = vld [vmem:[#allocation5 + $0x24] sm:$0xf0]  ;;  %v1357_v27 = vld [vmem:[#allocation5 + $0x28] sm:$0xf0]  ;;  %v1587_v28 = vld [vmem:[#allocation5 + $0x1d0] sm:$0xf]  ;;  %v1352_v35 = vor.u32 %v1860_v21, %v1349_v22 }
  0x2a   :  { %538 = vmatpush.bf16.msra.mxu3 %v1456_v62  ;;  %v1922_v29 = vld [vmem:[#allocation5 + $0x1ec] sm:$0xf0]  ;;  %v1918_v30 = vld [vmem:[#allocation5 + $0x1d4] sm:$0xf]  ;;  %v1595_v33 = vld [vmem:[#allocation5 + $0x1d8] sm:$0xf]  ;;  %v1356_v36 = vor.u32 %v1865_v25, %v1355_v23  ;;  %v1360_v39 = vor.u32 %v1861_v26, %v1357_v27 }
  0x2b   :  { %v1589_v32 = vld [vmem:[#allocation5 + $0x1f0] sm:$0xf0]  ;;  %v1923_v34 = vld [vmem:[#allocation5 + $0x1f4] sm:$0xf0]  ;;  %v1919_v37 = vld [vmem:[#allocation5 + $0x1dc] sm:$0xf]  ;;  %v1588_v40 = vor.u32 %v1922_v29, %v1587_v28 }
  0x2c   :  { %497 = vmatpush.bf16.msra.mxu0 %v1412_v4  ;;  %511 = vmatpush.bf16.msra.mxu1 %v1416_v5  ;;  %v1597_v38 = vld [vmem:[#allocation5 + $0x1f8] sm:$0xf0]  ;;  %v1592_v42 = vor.u32 %v1918_v30, %v1589_v32  ;;  %v1596_v43 = vor.u32 %v1923_v34, %v1595_v33  ;;  %v1555_v44 = vld [vmem:[#allocation5 + $0x190] sm:$0xf]  ;;  %v1910_v46 = vld [vmem:[#allocation5 + $0x194] sm:$0xf] }
  0x2d   :  { %525 = vmatpush.bf16.msra.mxu2 %v1420_v6  ;;  %v2221_v41 = vld [vmem:[#allocation2] sm:$0xff]  ;;  %v1914_v45 = vld [vmem:[#allocation5 + $0x1ac] sm:$0xf0]  ;;  %v1600_v47 = vor.u32 %v1919_v37, %v1597_v38  ;;  %v1557_v48 = vld [vmem:[#allocation5 + $0x1b0] sm:$0xf0]  ;;  %s1326_s18 = sshll.u32 %s2252_s5, 4  ;;  %s1327_s18 = int_to_ptr.hbm [resolvable:$true] %s1326_s18 }
  0x2e   :  { %539 = vmatpush.bf16.msra.mxu3 %v1424_v10  ;;  %v1563_v49 = vld [vmem:[#allocation5 + $0x198] sm:$0xf]  ;;  %v1911_v51 = vld [vmem:[#allocation5 + $0x19c] sm:$0xf]  ;;  %v1556_v53 = vor.u32 %v1914_v45, %v1555_v44  ;;  %v1560_v54 = vor.u32 %v1910_v46, %v1557_v48  ;;  %v1523_v56 = vld [vmem:[#allocation5 + $0x150] sm:$0xf] }
  0x2f   :  { %v1915_v50 = vld [vmem:[#allocation5 + $0x1b4] sm:$0xf0]  ;;  %v1565_v52 = vld [vmem:[#allocation5 + $0x1b8] sm:$0xf0]  ;;  %v1906_v57 = vld [vmem:[#allocation5 + $0x16c] sm:$0xf0] }
  0x30   :  { %498 = vmatpush.bf16.msra.mxu0 %v1380_v16  ;;  %512 = vmatpush.bf16.msra.mxu1 %v1384_v19  ;;  %v1564_v55 = vor.u32 %v1915_v50, %v1563_v49  ;;  %v1902_v58 = vld [vmem:[#allocation5 + $0x154] sm:$0xf]  ;;  %v1568_v59 = vor.u32 %v1911_v51, %v1565_v52  ;;  %v1531_v61 = vld [vmem:[#allocation5 + $0x158] sm:$0xf]  ;;  %v1903_v63 = vld [vmem:[#allocation5 + $0x15c] sm:$0xf]  ;;  %v1524_v1 = vor.u32 %v1906_v57, %v1523_v56 }
  0x31   :  { %526 = vmatpush.bf16.msra.mxu2 %v1388_v20  ;;  %v1525_v60 = vld [vmem:[#allocation5 + $0x170] sm:$0xf0]  ;;  %v1907_v62 = vld [vmem:[#allocation5 + $0x174] sm:$0xf0]  ;;  %v1533_v0 = vld [vmem:[#allocation5 + $0x178] sm:$0xf0] }
  0x32   :  { %540 = vmatpush.bf16.msra.mxu3 %v1392_v24  ;;  %v1528_v2 = vor.u32 %v1902_v58, %v1525_v60  ;;  %v1532_v3 = vor.u32 %v1907_v62, %v1531_v61  ;;  %v1491_v4 = vld [vmem:[#allocation5 + $0x110] sm:$0xf]  ;;  %v1894_v6 = vld [vmem:[#allocation5 + $0x114] sm:$0xf]  ;;  %v1536_v7 = vor.u32 %v1903_v63, %v1533_v0  ;;  %v1499_v9 = vld [vmem:[#allocation5 + $0x118] sm:$0xf] }
  0x33   :  { %v1898_v5 = vld [vmem:[#allocation5 + $0x12c] sm:$0xf0]  ;;  %v1493_v8 = vld [vmem:[#allocation5 + $0x130] sm:$0xf0]  ;;  %v1899_v10 = vld [vmem:[#allocation5 + $0x134] sm:$0xf0] }
  0x34   :  { %499 = vmatpush.bf16.msra.mxu0 %v1348_v31  ;;  %513 = vmatpush.bf16.msra.mxu1 %v1352_v35  ;;  %v1895_v11 = vld [vmem:[#allocation5 + $0x11c] sm:$0xf]  ;;  %v1492_v13 = vor.u32 %v1898_v5, %v1491_v4  ;;  %v1496_v14 = vor.u32 %v1894_v6, %v1493_v8  ;;  %v1500_v15 = vor.u32 %v1899_v10, %v1499_v9  ;;  %v1459_v16 = vld [vmem:[#allocation5 + $0xd0] sm:$0xf]  ;;  %v1886_v18 = vld [vmem:[#allocation5 + $0xd4] sm:$0xf] }
  0x35   :  { %527 = vmatpush.bf16.msra.mxu2 %v1356_v36  ;;  %v1501_v12 = vld [vmem:[#allocation5 + $0x138] sm:$0xf0]  ;;  %v1890_v17 = vld [vmem:[#allocation5 + $0xec] sm:$0xf0]  ;;  %v1461_v20 = vld [vmem:[#allocation5 + $0xf0] sm:$0xf0] }
  0x36   :  { %541 = vmatpush.bf16.msra.mxu3 %v1360_v39  ;;  %v1504_v19 = vor.u32 %v1895_v11, %v1501_v12  ;;  %v1467_v21 = vld [vmem:[#allocation5 + $0xd8] sm:$0xf]  ;;  %v1887_v23 = vld [vmem:[#allocation5 + $0xdc] sm:$0xf]  ;;  %v1460_v25 = vor.u32 %v1890_v17, %v1459_v16  ;;  %v1427_v26 = vld [vmem:[#allocation5 + $0x90] sm:$0xf]  ;;  %v1464_v27 = vor.u32 %v1886_v18, %v1461_v20 }
  0x37   :  { %500 = vmatmul.bf16.vlgmr.msra.gmra.mxu0 %v2221_v41  ;;  %514 = vmatmul.bf16.vlgmr.msra.gmra.mxu1 %v2221_v41  ;;  %v1891_v22 = vld [vmem:[#allocation5 + $0xf4] sm:$0xf0]  ;;  %v1469_v24 = vld [vmem:[#allocation5 + $0xf8] sm:$0xf0]  ;;  %v1882_v29 = vld [vmem:[#allocation5 + $0xac] sm:$0xf0] }
  0x38   :  { %548 = vmatpush.bf16.msrb.mxu0 %v1588_v40  ;;  %562 = vmatpush.bf16.msrb.mxu1 %v1592_v42  ;;  %v1468_v28 = vor.u32 %v1891_v22, %v1467_v21  ;;  %v1878_v30 = vld [vmem:[#allocation5 + $0x94] sm:$0xf]  ;;  %v1472_v31 = vor.u32 %v1887_v23, %v1469_v24  ;;  %v1435_v33 = vld [vmem:[#allocation5 + $0x98] sm:$0xf]  ;;  %v1879_v35 = vld [vmem:[#allocation5 + $0x9c] sm:$0xf]  ;;  %v1428_v37 = vor.u32 %v1882_v29, %v1427_v26 }
  0x39   :  { %576 = vmatpush.bf16.msrb.mxu2 %v1596_v43  ;;  %542 = vmatmul.bf16.vlgmr.msra.gmra.mxu3 %v2221_v41  ;;  %v1429_v32 = vld [vmem:[#allocation5 + $0xb0] sm:$0xf0]  ;;  %v1883_v34 = vld [vmem:[#allocation5 + $0xb4] sm:$0xf0]  ;;  %v1437_v36 = vld [vmem:[#allocation5 + $0xb8] sm:$0xf0] }
  0x3a   :  { %590 = vmatpush.bf16.msrb.mxu3 %v1600_v47  ;;  %528 = vmatmul.bf16.vlgmr.msra.gmra.mxu2 %v2221_v41  ;;  %v1432_v38 = vor.u32 %v1878_v30, %v1429_v32  ;;  %v1436_v39 = vor.u32 %v1883_v34, %v1435_v33  ;;  %v1395_v40 = vld [vmem:[#allocation5 + $0x50] sm:$0xf]  ;;  %v1870_v43 = vld [vmem:[#allocation5 + $0x54] sm:$0xf]  ;;  %v1440_v44 = vor.u32 %v1879_v35, %v1437_v36  ;;  %v1403_v46 = vld [vmem:[#allocation5 + $0x58] sm:$0xf] }
  0x3b   :  { %v1874_v42 = vld [vmem:[#allocation5 + $0x6c] sm:$0xf0]  ;;  %v1397_v45 = vld [vmem:[#allocation5 + $0x70] sm:$0xf0]  ;;  %v1875_v47 = vld [vmem:[#allocation5 + $0x74] sm:$0xf0] }
  0x3c   :  { %549 = vmatpush.bf16.msrb.mxu0 %v1556_v53  ;;  %563 = vmatpush.bf16.msrb.mxu1 %v1560_v54  ;;  %v1871_v48 = vld [vmem:[#allocation5 + $0x5c] sm:$0xf]  ;;  %v1396_v50 = vor.u32 %v1874_v42, %v1395_v40  ;;  %v1400_v51 = vor.u32 %v1870_v43, %v1397_v45  ;;  %v1404_v52 = vor.u32 %v1875_v47, %v1403_v46  ;;  %v1363_v53 = vld [vmem:[#allocation5 + $0x10] sm:$0xf]  ;;  %v1365_v57 = vld [vmem:[#allocation5 + $0x30] sm:$0xf0] }
  0x3d   :  { %577 = vmatpush.bf16.msrb.mxu2 %v1564_v55  ;;  %v1405_v49 = vld [vmem:[#allocation5 + $0x78] sm:$0xf0]  ;;  %v1866_v54 = vld [vmem:[#allocation5 + $0x2c] sm:$0xf0]  ;;  %v1862_v55 = vld [vmem:[#allocation5 + $0x14] sm:$0xf] }
  0x3e   :  { %591 = vmatpush.bf16.msrb.mxu3 %v1568_v59  ;;  %v1408_v56 = vor.u32 %v1871_v48, %v1405_v49  ;;  %v1371_v58 = vld [vmem:[#allocation5 + $0x18] sm:$0xf]  ;;  %v1863_v60 = vld [vmem:[#allocation5 + $0x1c] sm:$0xf]  ;;  %v1364_v62 = vor.u32 %v1866_v54, %v1363_v53  ;;  %v1368_v63 = vor.u32 %v1862_v55, %v1365_v57  ;;  %v1947_v4 = vld [vmem:[#allocation8 + $0xb8] sm:$0xff]  ;;  %s2177_s19 = smov 128  }
  0x3f   :  { %v1867_v59 = vld [vmem:[#allocation5 + $0x34] sm:$0xf0]  ;;  %v1373_v61 = vld [vmem:[#allocation5 + $0x38] sm:$0xf0]  ;;  %v1955_v6 = vld [vmem:[#allocation8 + $0xf8] sm:$0xff]  ;;  %s2178_s20 = smov 8  }
  0x40   :  { %550 = vmatpush.bf16.msrb.mxu0 %v1524_v1  ;;  %564 = vmatpush.bf16.msrb.mxu1 %v1528_v2  ;;  %v1372_v0 = vor.u32 %v1867_v59, %v1371_v58  ;;  %v1376_v1 = vor.u32 %v1863_v60, %v1373_v61  ;;  %v1931_v2 = vld [vmem:[#allocation8 + $0x38] sm:$0xff]  ;;  %v1930_v5 = vld [vmem:[#allocation8 + $0x30] sm:$0xff]  ;;  %v1929_v9 = vld [vmem:[#allocation8 + $0x28] sm:$0xff] }
  0x41   :  { %578 = vmatpush.bf16.msrb.mxu2 %v1532_v3  ;;  %v1939_v3 = vld [vmem:[#allocation8 + $0x78] sm:$0xff]  ;;  %v1946_v8 = vld [vmem:[#allocation8 + $0xb0] sm:$0xff]  ;;  %v1937_v11 = vld [vmem:[#allocation8 + $0x68] sm:$0xff] }
  0x42   :  { %592 = vmatpush.bf16.msrb.mxu3 %v1536_v7  ;;  %v1938_v7 = vld [vmem:[#allocation8 + $0x70] sm:$0xff]  ;;  %v1928_v12 = vld [vmem:[#allocation8 + $0x20] sm:$0xff]  ;;  %v1927_v16 = vld [vmem:[#allocation8 + $0x18] sm:$0xff] }
  0x43   :  { %v1954_v10 = vld [vmem:[#allocation8 + $0xf0] sm:$0xff]  ;;  %v1944_v17 = vld [vmem:[#allocation8 + $0xa0] sm:$0xff]  ;;  %v1943_v21 = vld [vmem:[#allocation8 + $0x98] sm:$0xff] }
  0x44   :  { %551 = vmatpush.bf16.msrb.mxu0 %v1492_v13  ;;  %565 = vmatpush.bf16.msrb.mxu1 %v1496_v14  ;;  %v1936_v13 = vld [vmem:[#allocation8 + $0x60] sm:$0xff]  ;;  %v1945_v14 = vld [vmem:[#allocation8 + $0xa8] sm:$0xff]  ;;  %v1934_v20 = vld [vmem:[#allocation8 + $0x50] sm:$0xff] }
  0x45   :  { %579 = vmatpush.bf16.msrb.mxu2 %v1500_v15  ;;  %v1953_v15 = vld [vmem:[#allocation8 + $0xe8] sm:$0xff]  ;;  %v1952_v18 = vld [vmem:[#allocation8 + $0xe0] sm:$0xff]  ;;  %v1951_v22 = vld [vmem:[#allocation8 + $0xd8] sm:$0xff] }
  0x46   :  { %593 = vmatpush.bf16.msrb.mxu3 %v1504_v19  ;;  %v1926_v19 = vld [vmem:[#allocation8 + $0x10] sm:$0xff]  ;;  %v1925_v23 = vld [vmem:[#allocation8 + $0x8] sm:$0xff]  ;;  %v1963_v29 = vld [vmem:[#allocation8 + $0x138] sm:$0xff] }
  0x47   :  { %v1933_v24 = vld [vmem:[#allocation8 + $0x48] sm:$0xff]  ;;  %v1950_v26 = vld [vmem:[#allocation8 + $0xd0] sm:$0xff]  ;;  %v1971_v30 = vld [vmem:[#allocation8 + $0x178] sm:$0xff] }
  0x48   :  { %552 = vmatpush.bf16.msrb.mxu0 %v1460_v25  ;;  %566 = vmatpush.bf16.msrb.mxu1 %v1464_v27  ;;  %v1942_v25 = vld [vmem:[#allocation8 + $0x90] sm:$0xff]  ;;  %v1924_v27 = vld [vmem:[#allocation8] sm:$0xff]  ;;  %v1949_v32 = vld [vmem:[#allocation8 + $0xc8] sm:$0xff] }
  0x49   :  { %580 = vmatpush.bf16.msrb.mxu2 %v1468_v28  ;;  %v1932_v28 = vld [vmem:[#allocation8 + $0x40] sm:$0xff]  ;;  %v1962_v33 = vld [vmem:[#allocation8 + $0x130] sm:$0xff]  ;;  %v1969_v40 = vld [vmem:[#allocation8 + $0x168] sm:$0xff] }
  0x4a   :  { %594 = vmatpush.bf16.msrb.mxu3 %v1472_v31  ;;  %v1941_v31 = vld [vmem:[#allocation8 + $0x88] sm:$0xff]  ;;  %v1970_v34 = vld [vmem:[#allocation8 + $0x170] sm:$0xff]  ;;  %v1940_v35 = vld [vmem:[#allocation8 + $0x80] sm:$0xff] }
  0x4b   :  { %v1948_v36 = vld [vmem:[#allocation8 + $0xc0] sm:$0xff]  ;;  %v2231_v42 = vld [vmem:[#allocation7] sm:$0xff]  ;;  %v1986_v45 = vld [vmem:[#allocation8 + $0x1f0] sm:$0xff] }
  0x4c   :  { %553 = vmatpush.bf16.msrb.mxu0 %v1428_v37  ;;  %567 = vmatpush.bf16.msrb.mxu1 %v1432_v38  ;;  %v1979_v37 = vld [vmem:[#allocation8 + $0x1b8] sm:$0xff]  ;;  %v1960_v46 = vld [vmem:[#allocation8 + $0x120] sm:$0xff]  ;;  %v150_v49 = vperm.slane %v2231_v42, 0  ;;  %v152_v58 = vperm.slane %v2231_v42, 2 }
  0x4d   :  { %581 = vmatpush.bf16.msrb.mxu2 %v1436_v39  ;;  %v1987_v38 = vld [vmem:[#allocation8 + $0x1f8] sm:$0xff]  ;;  %v1961_v39 = vld [vmem:[#allocation8 + $0x128] sm:$0xff]  ;;  %v1968_v48 = vld [vmem:[#allocation8 + $0x160] sm:$0xff] }
  0x4e   :  { %595 = vmatpush.bf16.msrb.mxu3 %v1440_v44  ;;  %v1978_v44 = vld [vmem:[#allocation8 + $0x1b0] sm:$0xff]  ;;  %v1959_v55 = vld [vmem:[#allocation8 + $0x118] sm:$0xff]  ;;  %v1976_v61 = vld [vmem:[#allocation8 + $0x1a0] sm:$0xff] }
  0x50   :  { %554 = vmatpush.bf16.msrb.mxu0 %v1396_v50  ;;  %568 = vmatpush.bf16.msrb.mxu1 %v1400_v51  ;;  %v151_v50 = vperm.slane %v2231_v42, 1  ;;  %v1977_v51 = vld [vmem:[#allocation8 + $0x1a8] sm:$0xff] }
  0x51   :  { %582 = vmatpush.bf16.msrb.mxu2 %v1404_v52  ;;  %v1985_v52 = vld [vmem:[#allocation8 + $0x1e8] sm:$0xff] }
  0x52   :  { %596 = vmatpush.bf16.msrb.mxu3 %v1408_v56  ;;  %v1967_v56 = vld [vmem:[#allocation8 + $0x158] sm:$0xff] }
  0x54   :  { %555 = vmatpush.bf16.msrb.mxu0 %v1364_v62  ;;  %569 = vmatpush.bf16.msrb.mxu1 %v1368_v63  ;;  %v1984_v62 = vld [vmem:[#allocation8 + $0x1e0] sm:$0xff]  ;;  %v153_v63 = vperm.slane %v2231_v42, 3 }
  0x55   :  { %583 = vmatpush.bf16.msrb.mxu2 %v1372_v0 }
  0x56   :  { %597 = vmatpush.bf16.msrb.mxu3 %v1376_v1 }
  0x57   :  { %556 = vmatmul.bf16.vlgmr.msrb.gmra.mxu0 %v2221_v41  ;;  %570 = vmatmul.bf16.vlgmr.msrb.gmra.mxu1 %v2221_v41 }
  0x58   :  { %1168 = vmatpush.bf16.msra.mxu0 %v1931_v2  ;;  %1182 = vmatpush.bf16.msra.mxu1 %v1939_v3  ;;  %v1958_v3 = vld [vmem:[#allocation8 + $0x110] sm:$0xff] }
  0x59   :  { %584 = vmatmul.bf16.vlgmr.msrb.gmra.mxu2 %v2221_v41  ;;  %598 = vmatmul.bf16.vlgmr.msrb.gmra.mxu3 %v2221_v41  ;;  %v1935_v41 = vld [vmem:[#allocation8 + $0x58] sm:$0xff] }
  0x5a   :  { %1196 = vmatpush.bf16.msra.mxu2 %v1947_v4  ;;  %1210 = vmatpush.bf16.msra.mxu3 %v1955_v6  ;;  %v1966_v4 = vld [vmem:[#allocation8 + $0x150] sm:$0xff] }
  0x5c   :  { %1169 = vmatpush.bf16.msra.mxu0 %v1930_v5  ;;  %1183 = vmatpush.bf16.msra.mxu1 %v1938_v7 }
  0x5e   :  { %1197 = vmatpush.bf16.msra.mxu2 %v1946_v8  ;;  %1211 = vmatpush.bf16.msra.mxu3 %v1954_v10 }
  0x60   :  { %1170 = vmatpush.bf16.msra.mxu0 %v1929_v9  ;;  %1184 = vmatpush.bf16.msra.mxu1 %v1937_v11 }
  0x62   :  { %1198 = vmatpush.bf16.msra.mxu2 %v1945_v14  ;;  %1212 = vmatpush.bf16.msra.mxu3 %v1953_v15 }
  0x64   :  { %1171 = vmatpush.bf16.msra.mxu0 %v1928_v12  ;;  %1185 = vmatpush.bf16.msra.mxu1 %v1936_v13  ;;  %v1975_v12 = vld [vmem:[#allocation8 + $0x198] sm:$0xff] }
  0x65   :  { %v1983_v13 = vld [vmem:[#allocation8 + $0x1d8] sm:$0xff] }
  0x66   :  { %1199 = vmatpush.bf16.msra.mxu2 %v1944_v17  ;;  %1213 = vmatpush.bf16.msra.mxu3 %v1952_v18  ;;  %v1957_v18 = vld [vmem:[#allocation8 + $0x108] sm:$0xff] }
  0x68   :  { %1172 = vmatpush.bf16.msra.mxu0 %v1927_v16  ;;  %1186 = vmatpush.bf16.msra.mxu1 %v1935_v41 }
  0x6a   :  { %1200 = vmatpush.bf16.msra.mxu2 %v1943_v21  ;;  %1214 = vmatpush.bf16.msra.mxu3 %v1951_v22  ;;  %v1974_v22 = vld [vmem:[#allocation8 + $0x190] sm:$0xff] }
  0x6c   :  { %1173 = vmatpush.bf16.msra.mxu0 %v1926_v19  ;;  %1187 = vmatpush.bf16.msra.mxu1 %v1934_v20  ;;  %v1965_v19 = vld [vmem:[#allocation8 + $0x148] sm:$0xff] }
  0x6e   :  { %1201 = vmatpush.bf16.msra.mxu2 %v1942_v25  ;;  %1215 = vmatpush.bf16.msra.mxu3 %v1950_v26 }
  0x70   :  { %1174 = vmatpush.bf16.msra.mxu0 %v1925_v23  ;;  %1188 = vmatpush.bf16.msra.mxu1 %v1933_v24  ;;  %v1982_v23 = vld [vmem:[#allocation8 + $0x1d0] sm:$0xff] }
  0x72   :  { %1202 = vmatpush.bf16.msra.mxu2 %v1941_v31  ;;  %1216 = vmatpush.bf16.msra.mxu3 %v1949_v32  ;;  %v1973_v31 = vld [vmem:[#allocation8 + $0x188] sm:$0xff] }
  0x73   :  { %v1981_v32 = vld [vmem:[#allocation8 + $0x1c8] sm:$0xff] }
  0x74   :  { %1175 = vmatpush.bf16.msra.mxu0 %v1924_v27  ;;  %1189 = vmatpush.bf16.msra.mxu1 %v1932_v28  ;;  %v1956_v28 = vld [vmem:[#allocation8 + $0x100] sm:$0xff] }
  0x76   :  { %1203 = vmatpush.bf16.msra.mxu2 %v1940_v35  ;;  %1217 = vmatpush.bf16.msra.mxu3 %v1948_v36  ;;  %v1972_v36 = vld [vmem:[#allocation8 + $0x180] sm:$0xff] }
  0x78   :  { %1224 = vmatpush.bf16.msrb.mxu0 %v1963_v29  ;;  %1238 = vmatpush.bf16.msrb.mxu1 %v1971_v30  ;;  %v1964_v29 = vld [vmem:[#allocation8 + $0x140] sm:$0xff] }
  0x7a   :  { %1252 = vmatpush.bf16.msrb.mxu2 %v1979_v37  ;;  %1266 = vmatpush.bf16.msrb.mxu3 %v1987_v38  ;;  %v1980_v38 = vld [vmem:[#allocation8 + $0x1c0] sm:$0xff] }
  0x7c   :  { %1225 = vmatpush.bf16.msrb.mxu0 %v1962_v33  ;;  %1239 = vmatpush.bf16.msrb.mxu1 %v1970_v34 }
  0x7e   :  { %1253 = vmatpush.bf16.msrb.mxu2 %v1978_v44  ;;  %1267 = vmatpush.bf16.msrb.mxu3 %v1986_v45 }
  0x80   :  { %1226 = vmatpush.bf16.msrb.mxu0 %v1961_v39  ;;  %1240 = vmatpush.bf16.msrb.mxu1 %v1969_v40 }
  0x82   :  { %1254 = vmatpush.bf16.msrb.mxu2 %v1977_v51  ;;  %1268 = vmatpush.bf16.msrb.mxu3 %v1985_v52  ;;  %v155_v51 = vperm.slane %v2231_v42, 5 }
  0x84   :  { %1227 = vmatpush.bf16.msrb.mxu0 %v1960_v46  ;;  %1241 = vmatpush.bf16.msrb.mxu1 %v1968_v48 }
  0x86   :  { %1255 = vmatpush.bf16.msrb.mxu2 %v1976_v61  ;;  %1269 = vmatpush.bf16.msrb.mxu3 %v1984_v62  ;;  %v156_v61 = vperm.slane %v2231_v42, 6 }
  0x88   :  { %1228 = vmatpush.bf16.msrb.mxu0 %v1959_v55  ;;  %1242 = vmatpush.bf16.msrb.mxu1 %v1967_v56 }
  0x8a   :  { %1256 = vmatpush.bf16.msrb.mxu2 %v1975_v12  ;;  %1270 = vmatpush.bf16.msrb.mxu3 %v1983_v13 }
  0x8c   :  { %1229 = vmatpush.bf16.msrb.mxu0 %v1958_v3  ;;  %1243 = vmatpush.bf16.msrb.mxu1 %v1966_v4 }
  0x8e   :  { %1257 = vmatpush.bf16.msrb.mxu2 %v1974_v22  ;;  %1271 = vmatpush.bf16.msrb.mxu3 %v1982_v23 }
  0x90   :  { %1230 = vmatpush.bf16.msrb.mxu0 %v1957_v18  ;;  %1244 = vmatpush.bf16.msrb.mxu1 %v1965_v19 }
  0x92   :  { %1258 = vmatpush.bf16.msrb.mxu2 %v1973_v31  ;;  %1272 = vmatpush.bf16.msrb.mxu3 %v1981_v32 }
  0x94   :  { %1231 = vmatpush.bf16.msrb.mxu0 %v1956_v28  ;;  %1245 = vmatpush.bf16.msrb.mxu1 %v1964_v29 }
  0x96   :  { %1259 = vmatpush.bf16.msrb.mxu2 %v1972_v36  ;;  %1273 = vmatpush.bf16.msrb.mxu3 %v1980_v38 }
  0xb4   :  { %v501_v43 = vpop.f32.mrf.mxu0  ;;  %v515_v47 = vpop.f32.mrf.mxu1 }
  0xb5   :  { %v502_v57 = vadd.f32 %v501_v43, %v150_v49  ;;  %v516_v59 = vadd.f32 %v515_v47, %v151_v50 }
  0xbc   :  { %v543_v54 = vpop.f32.mrf.mxu3  ;;  %v503_v60 = vpop.f32.mrf.mxu0 }
  0xbd   :  { %v529_v53 = vpop.f32.mrf.mxu2  ;;  %v504_v0 = vadd.f32 %v503_v60, %v150_v49  ;;  %v517_v1 = vpop.f32.mrf.mxu1  ;;  %v544_v8 = vadd.f32 %v543_v54, %v153_v63 }
  0xbe   :  { %v518_v2 = vadd.f32 %v517_v1, %v151_v50  ;;  %v530_v6 = vadd.f32 %v529_v53, %v152_v58  ;;  %v154_v50 = vperm.slane %v2231_v42, 4 }
  0xbf   :  { %v604_v5 = vpack.c.bf16 %v504_v0, %v502_v57 }
  0xc0   :  { %v605_v7 = vpack.c.bf16 %v518_v2, %v516_v59 }
  0xc1   :  { %v612_v9 = vunpack.c.l.bf16 %v604_v5  ;;  %v620_v10 = vunpack.c.h.bf16 %v604_v5 }
  0xc2   :  { %v613_v16 = vunpack.c.l.bf16 %v605_v7  ;;  %v621_v41 = vunpack.c.h.bf16 %v605_v7 }
  0xc3   :  { %2000 = vtanh.f32 %v612_v9 }
  0xc4   :  { %v545_v15 = vpop.f32.mrf.mxu3  ;;  %2002 = vtanh.f32 %v620_v10 }
  0xc5   :  { %v531_v11 = vpop.f32.mrf.mxu2  ;;  %v546_v17 = vadd.f32 %v545_v15, %v153_v63  ;;  %2004 = vtanh.f32 %v613_v16  ;;  %v157_v63 = vperm.slane %v2231_v42, 7 }
  0xc6   :  { %v532_v14 = vadd.f32 %v531_v11, %v152_v58  ;;  %2006 = vtanh.f32 %v621_v41 }
  0xc7   :  { %v607_v21 = vpack.c.bf16 %v546_v17, %v544_v8 }
  0xc8   :  { %v606_v20 = vpack.c.bf16 %v532_v14, %v530_v6 }
  0xc9   :  { %v615_v26 = vunpack.c.l.bf16 %v607_v21  ;;  %v623_v27 = vunpack.c.h.bf16 %v607_v21  ;;  %v2001_v30 = vpop.eup %2000 }
  0xca   :  { %v614_v24 = vunpack.c.l.bf16 %v606_v20  ;;  %v622_v25 = vunpack.c.h.bf16 %v606_v20  ;;  %v2003_v33 = vpop.eup %2002 }
  0xcb   :  { %v2005_v34 = vpop.eup %2004  ;;  %v644_v35 = vpack.c.bf16 %v2003_v33, %v2001_v30 }
  0xcc   :  { %2008 = vtanh.f32 %v614_v24  ;;  %v2007_v37 = vpop.eup %2006 }
  0xcd   :  { %2010 = vtanh.f32 %v622_v25  ;;  %1176 = vmatmul.bf16.vlgmr.msra.gmra.mxu0 %v644_v35  ;;  %v645_v39 = vpack.c.bf16 %v2007_v37, %v2005_v34 }
  0xce   :  { %2012 = vtanh.f32 %v615_v26 }
  0xcf   :  { %2014 = vtanh.f32 %v623_v27  ;;  %1190 = vmatmul.bf16.vlgmr.msra.gmra.mxu1 %v645_v39  ;;  %v1999_v27 = vld [vmem:[%s2251_s4] ss:$0 sm:$0xff]  ;;  %s2176_s4 = smov [#allocation10]  }
  0xd0   :  { %s1324_s15 = sshll.u32 %s2176_s4, 4  ;;  %s1325_s15 = int_to_ptr.vmem [resolvable:$true] %s1324_s15 }
  0xd2   :  { %v2009_v40 = vpop.eup %2008 }
  0xd3   :  { %v2011_v43 = vpop.eup %2010 }
  0xd4   :  { %v2013_v44 = vpop.eup %2012  ;;  %v557_v45 = vpop.f32.mrf.mxu0  ;;  %v646_v46 = vpack.c.bf16 %v2011_v43, %v2009_v40 }
  0xd5   :  { %v2015_v47 = vpop.eup %2014  ;;  %v571_v48 = vpop.f32.mrf.mxu1  ;;  %v558_v52 = vadd.f32 %v557_v45, %v154_v50 }
  0xd6   :  { %1204 = vmatmul.bf16.vlgmr.msra.gmra.mxu2 %v646_v46  ;;  %v647_v49 = vpack.c.bf16 %v2015_v47, %v2013_v44  ;;  %v572_v54 = vadd.f32 %v571_v48, %v155_v51 }
  0xd8   :  { %1218 = vmatmul.bf16.vlgmr.msra.gmra.mxu3 %v647_v49 }
  0xdc   :  { %v585_v53 = vpop.f32.mrf.mxu2  ;;  %v599_v55 = vpop.f32.mrf.mxu3 }
  0xdd   :  { %v559_v56 = vpop.f32.mrf.mxu0  ;;  %v573_v58 = vpop.f32.mrf.mxu1  ;;  %v586_v5 = vadd.f32 %v585_v53, %v156_v61  ;;  %v600_v8 = vadd.f32 %v599_v55, %v157_v63 }
  0xde   :  { %v560_v57 = vadd.f32 %v559_v56, %v154_v50  ;;  %v574_v59 = vadd.f32 %v573_v58, %v155_v51 }
  0xe0   :  { %v608_v60 = vpack.c.bf16 %v560_v57, %v558_v52  ;;  %v609_v62 = vpack.c.bf16 %v574_v59, %v572_v54 }
  0xe2   :  { %v616_v0 = vunpack.c.l.bf16 %v608_v60  ;;  %v624_v1 = vunpack.c.h.bf16 %v608_v60  ;;  %v617_v2 = vunpack.c.l.bf16 %v609_v62  ;;  %v625_v3 = vunpack.c.h.bf16 %v609_v62 }
  0xe4   :  { %2016 = vtanh.f32 %v616_v0  ;;  %v587_v4 = vpop.f32.mrf.mxu2  ;;  %v601_v7 = vpop.f32.mrf.mxu3 }
  0xe5   :  { %2018 = vtanh.f32 %v624_v1  ;;  %v588_v6 = vadd.f32 %v587_v4, %v156_v61  ;;  %v602_v9 = vadd.f32 %v601_v7, %v157_v63 }
  0xe6   :  { %2020 = vtanh.f32 %v617_v2 }
  0xe7   :  { %2022 = vtanh.f32 %v625_v3  ;;  %v610_v10 = vpack.c.bf16 %v588_v6, %v586_v5  ;;  %v611_v11 = vpack.c.bf16 %v602_v9, %v600_v8 }
  0xe9   :  { %v618_v12 = vunpack.c.l.bf16 %v610_v10  ;;  %v626_v13 = vunpack.c.h.bf16 %v610_v10  ;;  %v619_v42 = vunpack.c.l.bf16 %v611_v11  ;;  %v627_v15 = vunpack.c.h.bf16 %v611_v11 }
  0xea   :  { %v2017_v14 = vpop.eup %2016 }
  0xeb   :  { %v2019_v16 = vpop.eup %2018  ;;  %2024 = vtanh.f32 %v618_v12 }
  0xec   :  { %v2021_v41 = vpop.eup %2020  ;;  %2026 = vtanh.f32 %v626_v13  ;;  %v648_v17 = vpack.c.bf16 %v2019_v16, %v2017_v14 }
  0xed   :  { %v2023_v18 = vpop.eup %2022  ;;  %2028 = vtanh.f32 %v619_v42 }
  0xee   :  { %2030 = vtanh.f32 %v627_v15  ;;  %1232 = vmatmul.bf16.vlgmr.msrb.gmra.mxu0 %v648_v17  ;;  %v649_v19 = vpack.c.bf16 %v2023_v18, %v2021_v41 }
  0xf0   :  { %1246 = vmatmul.bf16.vlgmr.msrb.gmra.mxu1 %v649_v19 }
  0xf1   :  { %v2025_v20 = vpop.eup %2024 }
  0xf2   :  { %v2027_v21 = vpop.eup %2026 }
  0xf3   :  { %v2029_v22 = vpop.eup %2028  ;;  %v650_v23 = vpack.c.bf16 %v2027_v21, %v2025_v20 }
  0xf4   :  { %v2031_v24 = vpop.eup %2030 }
  0xf5   :  { %1260 = vmatmul.bf16.vlgmr.msrb.gmra.mxu2 %v650_v23  ;;  %v651_v25 = vpack.c.bf16 %v2031_v24, %v2029_v22 }
  0xf7   :  { %1274 = vmatmul.bf16.vlgmr.msrb.gmra.mxu3 %v651_v25 }
 0x14a   :  { %v1177_v26 = vpop.f32.mrf.mxu0 }
 0x14b   :  { %v1178_v29 = vadd.f32 %v1999_v27, %v1177_v26 }
 0x14c   :  { %v1191_v28 = vpop.f32.mrf.mxu1 }
 0x14d   :  { %v1192_v33 = vadd.f32 %v1191_v28, %v1178_v29 }
 0x152   :  { %v1179_v31 = vpop.f32.mrf.mxu0 }
 0x153   :  { %v1180_v37 = vadd.f32 %v1999_v27, %v1179_v31 }
 0x154   :  { %v1193_v34 = vpop.f32.mrf.mxu1 }
 0x155   :  { %v1194_v43 = vadd.f32 %v1193_v34, %v1180_v37 }
 0x159   :  { %v1205_v30 = vpop.f32.mrf.mxu2 }
 0x15a   :  { %v1206_v35 = vadd.f32 %v1205_v30, %v1192_v33 }
 0x15b   :  { %v1219_v32 = vpop.f32.mrf.mxu3 }
 0x15c   :  { %v1220_v39 = vadd.f32 %v1219_v32, %v1206_v35 }
 0x161   :  { %v1207_v38 = vpop.f32.mrf.mxu2 }
 0x162   :  { %v1208_v46 = vadd.f32 %v1207_v38, %v1194_v43 }
 0x163   :  { %v1221_v40 = vpop.f32.mrf.mxu3 }
 0x164   :  { %v1222_v50 = vadd.f32 %v1221_v40, %v1208_v46 }
 0x16b   :  { %v1233_v36 = vpop.f32.mrf.mxu0 }
 0x16c   :  { %v1234_v44 = vadd.f32 %v1233_v36, %v1220_v39 }
 0x16d   :  { %v1247_v45 = vpop.f32.mrf.mxu1 }
 0x16e   :  { %v1248_v47 = vadd.f32 %v1247_v45, %v1234_v44 }
 0x173   :  { %v1235_v48 = vpop.f32.mrf.mxu0 }
 0x174   :  { %v1236_v53 = vadd.f32 %v1235_v48, %v1222_v50 }
 0x175   :  { %v1249_v56 = vpop.f32.mrf.mxu1 }
 0x176   :  { %v1250_v57 = vadd.f32 %v1249_v56, %v1236_v53 }
 0x178   :  { %v1261_v49 = vpop.f32.mrf.mxu2 }
 0x179   :  { %v1262_v51 = vadd.f32 %v1261_v49, %v1248_v47 }
 0x17a   :  { %v1275_v52 = vpop.f32.mrf.mxu3 }
 0x17b   :  { %v1276_v54 = vadd.f32 %v1275_v52, %v1262_v51 }
 0x17d   :  { %v1857_v55 = vmul.f32 -1.442695, %v1276_v54 }
 0x17f   :  { %2032 = vpow2.f32 %v1857_v55 }
 0x180   :  { %v1263_v58 = vpop.f32.mrf.mxu2 }
 0x181   :  { %v1264_v59 = vadd.f32 %v1263_v58, %v1250_v57 }
 0x182   :  { %v1277_v60 = vpop.f32.mrf.mxu3 }
 0x183   :  { %v1278_v61 = vadd.f32 %v1277_v60, %v1264_v59 }
 0x185   :  { %v2033_v62 = vpop.eup %2032  ;;  %v1858_v63 = vmul.f32 -1.442695, %v1278_v61 }
 0x186   :  { %v1286_v0 = vadd.f32 1.0, %v2033_v62 }
 0x187   :  { %2034 = vpow2.f32 %v1858_v63 }
 0x188   :  { %2036 = vrcp.f32 %v1286_v0  ;;  %v1299_v6 = vand.u32 2147483648, %v1286_v0  ;;  %v1297_v8 = vand.u32 2147483647, %v1286_v0  ;;  %vm1293_vm1 = vweird.f32 %v1286_v0 }
 0x18a   :  { %v1300_v11 = vor.u32 1.1754944e-38, %v1299_v6  ;;  %vm1298_vm3 = vcmp.eq.f32.partialorder %v1297_v8, 8.507059e+37 }
 0x18d   :  { %v2035_v1 = vpop.eup %2034 }
 0x18e   :  { %v2037_v2 = vpop.eup %2036  ;;  %v1287_v3 = vadd.f32 1.0, %v2035_v1 }
 0x18f   :  { %v1289_v4 = vmul.f32 %v2037_v2, %v1286_v0  ;;  %vm1294_vm0 = vweird.f32 %v2037_v2 }
 0x190   :  { %2038 = vrcp.f32 %v1287_v3  ;;  %vm1295_vm2 = vmor %vm1293_vm1, %vm1294_vm0  ;;  %v1314_v15 = vand.u32 2147483648, %v1287_v3  ;;  %v1312_v41 = vand.u32 2147483647, %v1287_v3  ;;  %vm1308_vm5 = vweird.f32 %v1287_v3 }
 0x191   :  { %v1290_v5 = vsub.f32 1.0, %v1289_v4 }
 0x192   :  { %v1315_v18 = vor.u32 1.1754944e-38, %v1314_v15  ;;  %vm1313_vm7 = vcmp.eq.f32.partialorder %v1312_v41, 8.507059e+37 }
 0x193   :  { %v1291_v7 = vmul.f32 %v2037_v2, %v1290_v5 }
 0x195   :  { %v1292_v9 = vadd.f32 %v2037_v2, %v1291_v7 }
 0x196   :  { %v2039_v10 = vpop.eup %2038 }
 0x197   :  { %v1304_v12 = vmul.f32 %v2039_v10, %v1287_v3  ;;  %v1296_v13 = vsel %vm1295_vm2, %v2037_v2, %v1292_v9  ;;  %vm1309_vm4 = vweird.f32 %v2039_v10 }
 0x198   :  { %v1301_v14 = vsel %vm1298_vm3, %v1300_v11, %v1296_v13  ;;  %vm1310_vm6 = vmor %vm1308_vm5, %vm1309_vm4 }
 0x199   :  { %v1305_v42 = vsub.f32 1.0, %v1304_v12  ;;  %1318 = vst [vmem:[#allocation10] sm:$0xff] %v1301_v14 }
 0x19b   :  { %v1306_v16 = vmul.f32 %v2039_v10, %v1305_v42 }
 0x19d   :  { %v1307_v17 = vadd.f32 %v2039_v10, %v1306_v16 }
 0x19f   :  { %v1311_v19 = vsel %vm1310_vm6, %v2039_v10, %v1307_v17 }
 0x1a0   :  { %v1316_v20 = vsel %vm1313_vm7, %v1315_v18, %v1311_v19 }
 0x1a1   :  { %1319 = vst [vmem:[#allocation10 + $0x8] sm:$0xff] %v1316_v20 }
 0x1a2   :  { %1332 = dma.vmem_to_hbm [thread:$0]  %s1325_s15, 256, %s1327_s18, [#allocation4], %s2177_s19, %s2177_s19, %s2178_s20  }
 0x1a3   :  { %2166 = dma.done.wait [#allocation4], 256  }
 0x1a4   :  { %2167 = vsyncadd [#allocation4], 4294967040 }
 0x1a5   :  { %1337 = vsyncpa [#allocation3], 1 }
 0x1a6   :  { %1338 = vsyncpa [#allocation6], 1 }
 0x1a7   :  { %1339 = vsyncpa [#allocation9], 1 }
 0x1a8   :  { %1340 = vsyncpa [#allocation4], 1 }

</bundles_post_ra>
